<compile_context>
chip_gen: v6e
topology: v6e:2x2x1
jax: 0.10.0
libtpu: 0.0.40
codegen_flags: <defaults>
</compile_context>

<pallas_src>
import math

import jax
import jax.numpy as jnp
import numpy as np
from jax.experimental import pallas as pl
from jax.experimental.pallas import tpu as pltpu


def plr_kernel(x_ref, pos_sb_ref, s_ref, b_ref, out_ref):
    # x_ref/out_ref: (bt, C, hw_t)  pos_sb_ref: (1, C, hw_t)  s_ref/b_ref: (1, C, 1)
    # Compute in f32 regardless of I/O dtype (safe on v5e, which has no bf16 VALU).
    x = x_ref[...].astype(jnp.float32)
    pos_sb = pos_sb_ref[...]                      # relu(pos)*s + b, precomputed (f32)
    s = s_ref[...]                                # (1, C, 1) — implicit per-channel broadcast
    b = b_ref[...]

    t = jnp.maximum(x * s + pos_sb, 0.0)          # (x + pos) -> dwconv #1 (folded)
    t = jnp.maximum(t * s + b, 0.0)               # dwconv #2 (same weights)
    out_ref[...] = (t + x).astype(out_ref.dtype)  # final residual


def _sine_pos_embedding(C, H, W):
    """PositionEmbeddingSine(num_pos_feats=C//2, normalize=True) of this module
    (cumsum -> (i+1), then (i+1-0.5)/(H+eps)*2pi), followed by ReLU (self.linear1).
    Returns (C, H*W) float32 in NCHW channel order (pos_y channels, then pos_x)."""
    npf = C // 2
    eps = 1e-6
    scale = 2.0 * math.pi
    y = (jnp.arange(H, dtype=jnp.float32) + 0.5) / (H + eps) * scale
    x = (jnp.arange(W, dtype=jnp.float32) + 0.5) / (W + eps) * scale
    k = jnp.arange(npf, dtype=jnp.float32)
    dim_t = 10000.0 ** (2.0 * jnp.floor(k / 2.0) / npf)
    ya = jnp.broadcast_to(y[:, None, None], (H, W, npf)) / dim_t
    xa = jnp.broadcast_to(x[None, :, None], (H, W, npf)) / dim_t

    def interleave(a):
        s = jnp.sin(a[..., 0::2])
        c = jnp.cos(a[..., 1::2])
        return jnp.stack([s, c], axis=-1).reshape(H, W, npf)

    pos = jnp.concatenate([interleave(ya), interleave(xa)], axis=-1)   # (H, W, C)
    pos = jnp.maximum(pos, 0.0)                                        # ReLU on pos embedding
    return jnp.transpose(pos, (2, 0, 1)).reshape(C, H * W)             # tiny; one-time


def _vmem_capacity_bytes():
    try:
        return int(pltpu.get_tpu_info().vmem_capacity_bytes)
    except Exception:
        return 64 << 20                        # conservative (v7x per-TC) fallback


def _choose_tiles(B, C, HW, itemsize, target_block_bytes, min_grid_steps=4):
    """Pick (bt, hw_t): lane-axis tile (multiple of 128) + batch tile so that
    blocks stay under target_block_bytes and the grid has >= min_grid_steps steps."""
    # HW (lane) tile.
    hw_t = HW
    if C * HW * itemsize > target_block_bytes and HW % 128 == 0:
        best = None
        for cand in range(128, HW + 1, 128):
            if HW % cand == 0 and C * cand * itemsize <= target_block_bytes:
                best = cand
        hw_t = best if best is not None else 128
    # TODO(synk): if H*W is not a multiple of 128 we fall back to the full (masked)
    # lane dim rather than padding; correct, but stores are partially masked.
    n_hw = HW // hw_t

    # Batch tile: largest divisor of B under the block budget that still leaves
    # enough total grid steps for pipelining / dual-TC sharding.
    bt = 1
    for d in range(1, B + 1):
        if B % d != 0:
            continue
        block_bytes = d * C * hw_t * itemsize
        total_steps = (B // d) * n_hw
        if block_bytes <= target_block_bytes and total_steps >= min(min_grid_steps, B * n_hw):
            bt = d
    return bt, hw_t


def plr_pallas(x_nchw, scale, bias):
    B, C, H, W = x_nchw.shape
    assert B % 5 == 0, "batch must be divisible by 5 (loc/glb split)"
    HW = H * W
    dtype = x_nchw.dtype
    itemsize = np.dtype(dtype).itemsize

    vmem_cap = _vmem_capacity_bytes()
    # Larger streaming blocks on 128 MiB parts (v5e/v6e); tighter on v7x (64 MiB).
    target_block_bytes = (8 << 20) if vmem_cap >= (100 << 20) else (4 << 20)

    # Free reshape (no transpose, no extra HBM pass): channels stay the 2nd dim,
    # lanes = H*W (a multiple of 128 for typical feature maps).
    x3 = x_nchw.reshape(B, C, HW)

    s32 = scale.astype(jnp.float32)
    b32 = bias.astype(jnp.float32)
    pos = _sine_pos_embedding(C, H, W)                       # hoisted out of the kernel
    # Fold (x + relu(pos)) -> dwconv#1 into a single FMA: pos_sb = relu(pos)*s + b.
    pos_sb = (pos * s32[:, None] + b32[:, None])[None]       # (1, C, HW) f32
    s3 = s32.reshape(1, C, 1)
    b3 = b32.reshape(1, C, 1)
    # TODO(synk): for a bf16 end-to-end model, pass x/out as bf16 (halves HBM traffic);
    # the kernel already upcasts per-vreg to f32 for the arithmetic.

    bt, hw_t = _choose_tiles(B, C, HW, itemsize, target_block_bytes)
    n_hw = HW // hw_t
    grid = (n_hw, B // bt)                                   # batch innermost -> pos_sb resident

    # Actual VMEM requirement: double-buffered x-in + out blocks, double-buffered
    # pos_sb tile (re-fetched only n_hw times), tiny scale/bias, headroom.
    x_block = bt * C * hw_t * itemsize
    pos_block = C * hw_t * 4
    need = 4 * x_block + 2 * pos_block + (2 << 20)
    vmem_bytes = int(min(max(need, 16 << 20), int(vmem_cap * 0.9)))
    vmem_bytes = max(vmem_bytes, need)                       # never declare less than required

    out3 = pl.pallas_call(
        plr_kernel,
        out_shape=jax.ShapeDtypeStruct((B, C, HW), dtype),
        grid_spec=pltpu.PrefetchScalarGridSpec(
            num_scalar_prefetch=0,
            grid=grid,
            in_specs=[
                pl.BlockSpec((bt, C, hw_t), lambda h, i: (i, 0, h)),
                pl.BlockSpec((1, C, hw_t), lambda h, i: (0, 0, h)),   # resident across batch steps
                pl.BlockSpec((1, C, 1), lambda h, i: (0, 0, 0)),      # resident across grid
                pl.BlockSpec((1, C, 1), lambda h, i: (0, 0, 0)),      # resident across grid
            ],
            out_specs=pl.BlockSpec((bt, C, hw_t), lambda h, i: (i, 0, h)),
        ),
        # Each grid block is fully read before its writeback and blocks are disjoint,
        # so the output may reuse x's HBM buffer (XLA copies only if x stays live).
        input_output_aliases={0: 0},
        compiler_params=pltpu.CompilerParams(
            dimension_semantics=("parallel", "parallel"),
            vmem_limit_bytes=vmem_bytes,
        ),
    )(x3, pos_sb, s3, b3)

    out = out3.reshape(B, C, H, W)
    b_loc = (B // 5) * 4
    # Call under jit so these slices fuse with consumers instead of copying.
    return out[:b_loc], out[b_loc:]


def plr_reference(x_nchw, scale, bias):
    """Pure-JAX reference mirroring the PyTorch forward (inference-mode BN)."""
    B, C, H, W = x_nchw.shape
    assert B % 5 == 0
    npf = C // 2
    eps = 1e-6
    two_pi = 2.0 * math.pi
    y = (jnp.arange(H, dtype=jnp.float32) + 0.5) / (H + eps) * two_pi
    x = (jnp.arange(W, dtype=jnp.float32) + 0.5) / (W + eps) * two_pi
    k = jnp.arange(npf, dtype=jnp.float32)
    dim_t = 10000.0 ** (2.0 * jnp.floor(k / 2.0) / npf)
    ya = jnp.broadcast_to(y[:, None, None], (H, W, npf)) / dim_t
    xa = jnp.broadcast_to(x[None, :, None], (H, W, npf)) / dim_t

    def interleave(a):
        s = jnp.sin(a[..., 0::2])
        c = jnp.cos(a[..., 1::2])
        return jnp.stack([s, c], axis=-1).reshape(H, W, npf)

    pos = jnp.concatenate([interleave(ya), interleave(xa)], axis=-1)   # (H, W, C)
    pos = jnp.maximum(pos, 0.0)
    pos_nchw = jnp.transpose(pos, (2, 0, 1))[None]                     # (1, C, H, W)

    s = scale[None, :, None, None]
    b = bias[None, :, None, None]
    t = x_nchw + pos_nchw
    t = jnp.maximum(t * s + b, 0.0)
    t = jnp.maximum(t * s + b, 0.0)
    out = t + x_nchw
    b_loc = (B // 5) * 4
    return out[:b_loc], out[b_loc:]


if __name__ == "__main__":
    B, C, H, W = 5, 32, 16, 16            # batch must be divisible by 5 (loc/glb split)

    key = jax.random.PRNGKey(0)
    kx, kw, kg, kb, km, kv = jax.random.split(key, 6)
    x = jax.random.normal(kx, (B, C, H, W), jnp.float32)

    # Deterministic synthetic parameters for _DWConv (Conv2d(C,C,1,groups=C,bias=False) + BN).
    # TODO(synk): BatchNorm is evaluated in inference mode with fixed running stats;
    # training-mode batch statistics are not reproduced.
    conv_w = 1.0 + 0.5 * jax.random.normal(kw, (C,), jnp.float32)     # (C,1,1,1) squeezed
    gamma = jax.random.uniform(kg, (C,), jnp.float32, minval=0.5, maxval=1.5)
    beta = 0.1 * jax.random.normal(kb, (C,), jnp.float32)
    run_mean = 0.1 * jax.random.normal(km, (C,), jnp.float32)
    run_var = jax.random.uniform(kv, (C,), jnp.float32, minval=0.5, maxval=1.5)
    inv_std = 1.0 / jnp.sqrt(run_var + 1e-5)
    scale = conv_w * gamma * inv_std
    bias = beta - run_mean * gamma * inv_std

    # Reference first (keeps x's original contents independent of output aliasing).
    loc_ref, glb_ref = plr_reference(x, scale, bias)
    jax.block_until_ready((loc_ref, glb_ref))

    plr_jit = jax.jit(plr_pallas)
    loc_out, glb_out = plr_jit(x, scale, bias)
    jax.block_until_ready((loc_out, glb_out))

    np.testing.assert_allclose(np.asarray(loc_out), np.asarray(loc_ref), rtol=1e-5, atol=1e-5)
    np.testing.assert_allclose(np.asarray(glb_out), np.asarray(glb_ref), rtol=1e-5, atol=1e-5)
    assert loc_out.shape == (4, C, H, W) and glb_out.shape == (1, C, H, W)

    print("KERNEL_OK")
</pallas_src>

<mosaic_0001>
module attributes {stable_mosaic.version = 11 : i64} {
  func.func @plr_kernel(%arg0: i32, %arg1: i32, %arg2: memref<1x32x256xf32, #tpu.memory_space<vmem>>, %arg3: memref<1x32x256xf32, #tpu.memory_space<vmem>>, %arg4: memref<1x32x1xf32, #tpu.memory_space<vmem>>, %arg5: memref<1x32x1xf32, #tpu.memory_space<vmem>>, %arg6: memref<1x32x256xf32, #tpu.memory_space<vmem>>) attributes {dimension_semantics = [#tpu.dimension_semantics<parallel>, #tpu.dimension_semantics<parallel>], iteration_bounds = array<i64: 1, 5>, scalar_prefetch = 0 : i64, scratch_operands = 0 : i64, tpu.core_type = #tpu.core_type<tc>, window_params = [{transform_indices = @transform_0, window_bounds = array<i64: 1, 32, 256>}, {transform_indices = @transform_1, window_bounds = array<i64: 1, 32, 256>}, {pipeline_mode = #tpu.pipeline_mode<synchronous>, transform_indices = @transform_2, window_bounds = array<i64: 1, 32, 1>}, {pipeline_mode = #tpu.pipeline_mode<synchronous>, transform_indices = @transform_3, window_bounds = array<i64: 1, 32, 1>}, {transform_indices = @transform_4, window_bounds = array<i64: 1, 32, 256>}]} {
    %c0 = arith.constant 0 : index
    %c0_0 = arith.constant 0 : index
    %c0_1 = arith.constant 0 : index
    %0 = vector.load %arg2[%c0, %c0_0, %c0_1] : memref<1x32x256xf32, #tpu.memory_space<vmem>>, vector<1x32x256xf32>
    %c0_2 = arith.constant 0 : index
    %c0_3 = arith.constant 0 : index
    %c0_4 = arith.constant 0 : index
    %1 = vector.load %arg3[%c0_2, %c0_3, %c0_4] : memref<1x32x256xf32, #tpu.memory_space<vmem>>, vector<1x32x256xf32>
    %c0_5 = arith.constant 0 : index
    %c0_6 = arith.constant 0 : index
    %c0_7 = arith.constant 0 : index
    %2 = vector.load %arg4[%c0_5, %c0_6, %c0_7] : memref<1x32x1xf32, #tpu.memory_space<vmem>>, vector<1x32x1xf32>
    %c0_8 = arith.constant 0 : index
    %c0_9 = arith.constant 0 : index
    %c0_10 = arith.constant 0 : index
    %3 = vector.load %arg5[%c0_8, %c0_9, %c0_10] : memref<1x32x1xf32, #tpu.memory_space<vmem>>, vector<1x32x1xf32>
    %4 = vector.broadcast %2 : vector<1x32x1xf32> to vector<1x32x256xf32>
    %5 = arith.mulf %0, %4 : vector<1x32x256xf32>
    %6 = arith.addf %5, %1 : vector<1x32x256xf32>
    %cst = arith.constant 0.000000e+00 : f32
    %7 = vector.broadcast %cst : f32 to vector<1x32x256xf32>
    %8 = arith.maximumf %6, %7 : vector<1x32x256xf32>
    %9 = vector.broadcast %2 : vector<1x32x1xf32> to vector<1x32x256xf32>
    %10 = arith.mulf %8, %9 : vector<1x32x256xf32>
    %11 = vector.broadcast %3 : vector<1x32x1xf32> to vector<1x32x256xf32>
    %12 = arith.addf %10, %11 : vector<1x32x256xf32>
    %cst_11 = arith.constant 0.000000e+00 : f32
    %13 = vector.broadcast %cst_11 : f32 to vector<1x32x256xf32>
    %14 = arith.maximumf %12, %13 : vector<1x32x256xf32>
    %15 = arith.addf %14, %0 : vector<1x32x256xf32>
    %c0_12 = arith.constant 0 : index
    %c0_13 = arith.constant 0 : index
    %c0_14 = arith.constant 0 : index
    %16 = vector.load %arg6[%c0_12, %c0_13, %c0_14] : memref<1x32x256xf32, #tpu.memory_space<vmem>>, vector<1x32x256xf32>
    tpu.vector_store %arg6[%c0_12, %c0_13, %c0_14], %15 {strides = array<i32>} : memref<1x32x256xf32, #tpu.memory_space<vmem>>, vector<1x32x256xf32>,
    return
  }
  func.func @transform_0(%arg0: i32, %arg1: i32) -> (i32, i32, i32) {
    %c0_i32 = arith.constant 0 : i32
    %c0_i32_0 = arith.constant 0 : i32
    return %arg1, %c0_i32, %arg0 : i32, i32, i32
  }
  func.func @transform_1(%arg0: i32, %arg1: i32) -> (i32, i32, i32) {
    %c0_i32 = arith.constant 0 : i32
    %c0_i32_0 = arith.constant 0 : i32
    %c0_i32_1 = arith.constant 0 : i32
    return %c0_i32, %c0_i32_0, %arg0 : i32, i32, i32
  }
  func.func @transform_2(%arg0: i32, %arg1: i32) -> (i32, i32, i32) {
    %c0_i32 = arith.constant 0 : i32
    %c0_i32_0 = arith.constant 0 : i32
    %c0_i32_1 = arith.constant 0 : i32
    %c0_i32_2 = arith.constant 0 : i32
    return %c0_i32, %c0_i32_0, %c0_i32_1 : i32, i32, i32
  }
  func.func @transform_3(%arg0: i32, %arg1: i32) -> (i32, i32, i32) {
    %c0_i32 = arith.constant 0 : i32
    %c0_i32_0 = arith.constant 0 : i32
    %c0_i32_1 = arith.constant 0 : i32
    %c0_i32_2 = arith.constant 0 : i32
    return %c0_i32, %c0_i32_0, %c0_i32_1 : i32, i32, i32
  }
  func.func @transform_4(%arg0: i32, %arg1: i32) -> (i32, i32, i32) {
    %c0_i32 = arith.constant 0 : i32
    %c0_i32_0 = arith.constant 0 : i32
    return %arg1, %c0_i32, %arg0 : i32, i32, i32
  }
}

</mosaic_0001>

<bundles_post_ra>
// kernel: plr_pallas.1
= control target key start
LH: loop header
LB: loop body
LE: loop exit
PB: predicated region body
PF: predicated region fallthrough
CT: control target
= control target key end

     0   :  { %s580_s15 = smov 0   ;;  %s582_s16 = smov 0   ;;  %s696_s0 = inlined_call_operand.vmem [shape: f32[5,32,256], index: 0, kind: input, shape index: {}, may-alias: {0,4}]   ;;  %s697_s1 = inlined_call_operand.vmem [shape: f32[1,32,256], index: 1, kind: input, shape index: {}]   ;;  %s698_s2 = inlined_call_operand.vmem [shape: f32[1,32,1], index: 2, kind: input, shape index: {}]   ;;  %s699_s3 = inlined_call_operand.vmem [shape: f32[1,32,1], index: 3, kind: input, shape index: {}]   ;;  %s700_s4 = inlined_call_operand.vmem [shape: f32[5,32,256], index: 4, kind: output, shape index: {}, may-alias: {0,4}]  }
   0x1   :  { %s584_s17 = smov 0  }
   0x2 LB: > { %s23_s18 = sadd.s32 1, %s548_s16  ;;  %p494_p0 = scmp.ge.s32.totalorder %s552_s17, 1  ;;  %s552_s17 = sphi %s584_s17, %s14_s17   ;;  %s548_s16 = sphi %s582_s16, %s702_s16   ;;  %s544_s15 = sphi %s580_s15, %s701_s15  }
   0x3   : > { %p24_p1 = scmp.ge.s32.totalorder %s23_s18, 5  ;;  %p194_p2 = scmp.lt.s32.totalorder %s552_s17, 6 }
   0x5   : > { %s704_s18 = smov (%p24_p1, %s23_s18), 0  ;;  %p195_p3 = pnand %p494_p0, %p194_p2 }
   0x6   : > { %p234_p4 = scmp.lt.s32.totalorder (!%p195_p3), %s544_s15, 4 }
   0x7   : > { %198 = sbr.rel (%p195_p3) target bundleno = 159 (0x9f), region = 36 }
   0xc   : > { %v277_v0 = vld [vmem:[%s698_s2 + $0x10] sm:$0xff]  ;;  %v275_v1 = vld [vmem:[%s698_s2] sm:$0xff]  ;;  %v554_v2 = vmov 0   ;;  %v278_v3 = vld [vmem:[%s698_s2 + $0x18] sm:$0xff]  ;;  %s706_s15 = smov (!%p234_p4, %s544_s15), 4 }
   0xd   : > { %529 = vset.pattern.permute.xlu1 %v554_v2  ;;  %528 = vset.pattern.permute.xlu0 %v554_v2  ;;  %v276_v4 = vld [vmem:[%s698_s2 + $0x8] sm:$0xff]  ;;  %v279_v6 = vld [vmem:[%s699_s3] sm:$0xff]  ;;  %v282_v7 = vld [vmem:[%s699_s3 + $0x18] sm:$0xff]  ;;  %s501_s9 = sshll.u32 %s706_s15, 6 }
   0xe   : > { %295 = vperm.xlu1 %529, %v277_v0   ;;  %285 = vperm.xlu0 %528, %v275_v1   ;;  %v280_v5 = vld [vmem:[%s699_s3 + $0x8] sm:$0xff]  ;;  %v281_v8 = vld [vmem:[%s699_s3 + $0x10] sm:$0xff]  ;;  %s241_s12 = scalar_lea.vmem %s696_s0, %s501_s9  ;;  %v267_v15 = vld [vmem:[%s697_s1] sm:$0xff]  ;;  %s257_s10 = scalar_lea.vmem %s700_s4, %s501_s9 }
   0xf   : > { %v634_v9 = vld [vmem:[%s241_s12 + $0x20] sm:$0xff]  ;;  %v636_v10 = vld [vmem:[%s241_s12 + $0x28] sm:$0xff]  ;;  %v652_v21 = vld [vmem:[%s241_s12 + $0x30] sm:$0xff] }
  0x10   : > { %v638_v11 = vld [vmem:[%s241_s12] sm:$0xff]  ;;  %v640_v12 = vld [vmem:[%s241_s12 + $0x8] sm:$0xff]  ;;  %v660_v24 = vld [vmem:[%s241_s12 + $0x38] sm:$0xff] }
  0x11   : > { %v268_v16 = vld [vmem:[%s697_s1 + $0x8] sm:$0xff]  ;;  %v271_v22 = vld [vmem:[%s697_s1 + $0x20] sm:$0xff]  ;;  %v261_v25 = vld [vmem:[%s241_s12 + $0x10] sm:$0xff] }
  0x12   : > { %300 = vperm.xlu1 %529, %v278_v3   ;;  %290 = vperm.xlu0 %528, %v276_v4   ;;  %v272_v23 = vld [vmem:[%s697_s1 + $0x28] sm:$0xff]  ;;  %v262_v26 = vld [vmem:[%s241_s12 + $0x18] sm:$0xff]  ;;  %v269_v27 = vld [vmem:[%s697_s1 + $0x10] sm:$0xff] }
  0x13   : > { %v270_v32 = vld [vmem:[%s697_s1 + $0x18] sm:$0xff]  ;;  %v273_v33 = vld [vmem:[%s697_s1 + $0x30] sm:$0xff] }
  0x14   : > { %v274_v34 = vld [vmem:[%s697_s1 + $0x38] sm:$0xff] }
  0x16   : > { %342 = vperm.xlu1 %529, %v280_v5   ;;  %337 = vperm.xlu0 %528, %v279_v6  }
  0x1a   : > { %352 = vperm.xlu1 %529, %v282_v7   ;;  %347 = vperm.xlu0 %528, %v281_v8  }
  0x89   : > { %v296_v13 = vpop.permute.xlu1 %295  ;;  %v286_v14 = vpop.permute.xlu0 %285 }
  0x8a   : > { %v307_v17 = vmul.f32 %v296_v13, %v634_v9  ;;  %v308_v18 = vmul.f32 %v296_v13, %v636_v10  ;;  %v303_v19 = vmul.f32 %v286_v14, %v638_v11  ;;  %v304_v20 = vmul.f32 %v286_v14, %v640_v12 }
  0x8c   : > { %v311_v28 = vadd.f32 %v303_v19, %v267_v15  ;;  %v312_v29 = vadd.f32 %v304_v20, %v268_v16  ;;  %v315_v35 = vadd.f32 %v307_v17, %v271_v22  ;;  %v316_v36 = vadd.f32 %v308_v18, %v272_v23 }
  0x8d   : > { %v301_v30 = vpop.permute.xlu1 %300  ;;  %v291_v31 = vpop.permute.xlu0 %290 }
  0x8e   : > { %v309_v37 = vmul.f32 %v301_v30, %v652_v21  ;;  %v310_v38 = vmul.f32 %v301_v30, %v660_v24  ;;  %v305_v39 = vmul.f32 %v291_v31, %v261_v25  ;;  %v306_v40 = vmul.f32 %v291_v31, %v262_v26 }
  0x8f   : > { %v319_v41 = vmax.f32 %v311_v28, 0.0  ;;  %v320_v42 = vmax.f32 %v312_v29, 0.0  ;;  %v323_v51 = vmax.f32 %v315_v35, 0.0  ;;  %v324_v52 = vmax.f32 %v316_v36, 0.0 }
  0x90   : > { %v313_v43 = vadd.f32 %v305_v39, %v269_v27  ;;  %v314_v44 = vadd.f32 %v306_v40, %v270_v32  ;;  %v317_v45 = vadd.f32 %v309_v37, %v273_v33  ;;  %v318_v46 = vadd.f32 %v310_v38, %v274_v34 }
  0x91   : > { %v343_v47 = vpop.permute.xlu1 %342  ;;  %v338_v48 = vpop.permute.xlu0 %337  ;;  %v327_v49 = vmul.f32 %v319_v41, %v286_v14  ;;  %v328_v50 = vmul.f32 %v320_v42, %v286_v14  ;;  %v331_v3 = vmul.f32 %v323_v51, %v296_v13  ;;  %v332_v4 = vmul.f32 %v324_v52, %v296_v13 }
  0x92   : > { %v321_v53 = vmax.f32 %v313_v43, 0.0  ;;  %v322_v54 = vmax.f32 %v314_v44, 0.0  ;;  %v325_v55 = vmax.f32 %v317_v45, 0.0  ;;  %v326_v56 = vmax.f32 %v318_v46, 0.0 }
  0x93   : > { %v355_v57 = vadd.f32 %v338_v48, %v327_v49  ;;  %v356_v58 = vadd.f32 %v338_v48, %v328_v50 }
  0x94   : > { %v329_v59 = vmul.f32 %v321_v53, %v291_v31  ;;  %v330_v60 = vmul.f32 %v322_v54, %v291_v31  ;;  %v333_v61 = vmul.f32 %v325_v55, %v301_v30  ;;  %v334_v62 = vmul.f32 %v326_v56, %v301_v30 }
  0x95   : > { %v363_v63 = vmax.f32 %v355_v57, 0.0  ;;  %v364_v0 = vmax.f32 %v356_v58, 0.0  ;;  %v353_v1 = vpop.permute.xlu1 %352  ;;  %v348_v2 = vpop.permute.xlu0 %347 }
  0x96   : > { %v357_v5 = vadd.f32 %v343_v47, %v329_v59  ;;  %v358_v6 = vadd.f32 %v343_v47, %v330_v60  ;;  %v361_v7 = vadd.f32 %v353_v1, %v333_v61  ;;  %v362_v8 = vadd.f32 %v353_v1, %v334_v62 }
  0x97   : > { %v371_v14 = vadd.f32 %v363_v63, %v638_v11  ;;  %v372_v15 = vadd.f32 %v364_v0, %v640_v12  ;;  %v359_v16 = vadd.f32 %v348_v2, %v331_v3  ;;  %v360_v17 = vadd.f32 %v348_v2, %v332_v4 }
  0x98   : > { %v365_v18 = vmax.f32 %v357_v5, 0.0  ;;  %v366_v19 = vmax.f32 %v358_v6, 0.0  ;;  %v369_v20 = vmax.f32 %v361_v7, 0.0  ;;  %v370_v22 = vmax.f32 %v362_v8, 0.0 }
  0x99   : > { %379 = vst [vmem:[%s257_s10] sm:$0xff] %v371_v14  ;;  %380 = vst [vmem:[%s257_s10 + $0x8] sm:$0xff] %v372_v15  ;;  %v367_v13 = vmax.f32 %v359_v16, 0.0  ;;  %v368_v23 = vmax.f32 %v360_v17, 0.0 }
  0x9a   : > { %v373_v27 = vadd.f32 %v365_v18, %v261_v25  ;;  %v374_v28 = vadd.f32 %v366_v19, %v262_v26  ;;  %v377_v29 = vadd.f32 %v369_v20, %v652_v21  ;;  %v378_v30 = vadd.f32 %v370_v22, %v660_v24 }
  0x9b   : > { %v375_v11 = vadd.f32 %v367_v13, %v634_v9  ;;  %v376_v12 = vadd.f32 %v368_v23, %v636_v10 }
  0x9c   : > { %381 = vst [vmem:[%s257_s10 + $0x10] sm:$0xff] %v373_v27  ;;  %382 = vst [vmem:[%s257_s10 + $0x18] sm:$0xff] %v374_v28 }
  0x9d   : > { %385 = vst [vmem:[%s257_s10 + $0x30] sm:$0xff] %v377_v29  ;;  %386 = vst [vmem:[%s257_s10 + $0x38] sm:$0xff] %v378_v30 }
  0x9e   : > { %383 = vst [vmem:[%s257_s10 + $0x20] sm:$0xff] %v375_v11  ;;  %384 = vst [vmem:[%s257_s10 + $0x28] sm:$0xff] %v376_v12 }
  0x9f PF: > { %s14_s17 = sadd.s32 1, %s552_s17   ;;  %s701_s15 = smov %s548_s16 }
  0xa0   : > { %p11_p5 = scmp.ge.s32.totalorder %s14_s17, 7   ;;  %s702_s16 = smov %s704_s18 }
  0xa2   :  { %13 = sbr.rel (!%p11_p5) target bundleno = 2 (0x2), region = 69 }

</bundles_post_ra>
